<compile_context>
chip_gen: v6e
topology: v6e:2x2x1
jax: 0.10.0
libtpu: 0.0.40
codegen_flags: <defaults>
</compile_context>

<pallas_src>
import functools
import math

import jax
import jax.numpy as jnp
from jax.experimental import pallas as pl
from jax.experimental.pallas import tpu as pltpu


# ----------------------------------------------------------------------------
# Kernel
# ----------------------------------------------------------------------------
def _dc_down_kernel(x_ref, halo_ref, w_ref, b_ref, o_ref, *, TH, Wo, C, fuse):
    """One (batch, row-tile, co-tile) step.

    x_ref:    [1, 2*TH, Wo, 2C]   input rows [2*TH*t, 2*TH*(t+1)) (cols merged 2C)
    halo_ref: [1, 1,    Wo, 2C]   input row 2*TH*t - 1 (zeros for t == 0)
    w_ref:    [9C, TCo]           packed (pool-folded) weights, co-tile slice
    b_ref:    [1, TCo]            bias (f32)
    o_ref:    [1, TH*Wo, TCo]
    """
    C2 = 2 * C
    x = x_ref[0]                                   # [2TH, Wo, 2C]
    xr = x.reshape(TH, 2, Wo, C2)                  # split row parity (outer dims)
    mid = xr[:, 0]                                 # ki=1 rows  (input row 2*ho)
    bot = xr[:, 1]                                 # ki=2 rows  (input row 2*ho+1)
    if TH > 1:                                     # ki=0 rows  (input row 2*ho-1)
        top = jnp.concatenate([halo_ref[0], bot[:TH - 1]], axis=0)
    else:
        top = halo_ref[0]

    def left(p):
        # channels of input column 2*wo - 1 (zero left-pad at wo == 0):
        # = odd-column half of the previous wo position.
        z = jnp.zeros((TH, 1, C), dtype=p.dtype)
        if Wo > 1:
            return jnp.concatenate([z, p[:, :Wo - 1, C:C2]], axis=1)
        return z

    M = TH * Wo
    ops = [mid, bot, top, left(mid), left(bot), left(top)]
    ops = [o.reshape(M, o.shape[-1]) for o in ops]

    if fuse:
        # Single K=9C im2col matmul (lane concat is tile-aligned when C%128==0).
        patch = jnp.concatenate(ops, axis=-1)                       # [M, 9C]
        acc = jnp.dot(patch, w_ref[...], preferred_element_type=jnp.float32)
    else:
        # 6 grouped dots (K = 2C,2C,2C,C,C,C) summed into one f32 chain so the
        # compiler can keep the accumulation on the MXU result path.
        off = 0
        acc = None
        for o in ops:
            k = o.shape[-1]
            d = jnp.dot(o, w_ref[off:off + k, :],
                        preferred_element_type=jnp.float32)
            acc = d if acc is None else acc + d
            off += k

    o_ref[0] = (acc + b_ref[...]).astype(o_ref.dtype)


# ----------------------------------------------------------------------------
# Tile selection (generation-aware)
# ----------------------------------------------------------------------------
@functools.lru_cache(maxsize=1)
def _vmem_capacity_bytes():
    try:
        info = pltpu.get_tpu_info()
        cap = getattr(info, "vmem_capacity_bytes", None)
        if cap:
            return int(cap)
    except Exception:
        pass
    return 64 * 1024 * 1024   # conservative fallback (v7x per-core VMEM)


def _per_step_vmem_bytes(TH, Wo, C, TCo, in_item, fuse):
    M = TH * Wo
    # streamed, double-buffered: x block + halo + output block
    streamed = 2 * ((2 * TH + 1) * Wo * 2 * C * in_item + M * TCo * in_item)
    # resident weights/bias (constant index maps) counted once (review item)
    resident = (9 * C * TCo + TCo) * 4
    # in-kernel temporaries: 3 row planes + 3 shifted operands (+ im2col buffer)
    temps = (3 * M * 2 * C + 3 * M * C) * in_item
    if fuse:
        temps += M * 9 * C * in_item
    temps += 2 * M * TCo * 4                       # f32 accumulator + staging
    return streamed + resident + temps


def _pick_row_tile(Ho, Wo, C, TCo, in_item, fuse, budget, want_split):
    cands = [t for t in range(Ho, 0, -1)
             if Ho % t == 0 and (t == Ho or (t * Wo) % 8 == 0)]

    def fits(t):
        return _per_step_vmem_bytes(t, Wo, C, TCo, in_item, fuse) <= budget

    th = next((t for t in cands if fits(t)), cands[-1])
    if want_split and Ho // th < 2:
        # keep both TensorCores busy on 2-TC parts (v7x) for single-image runs
        split = [t for t in cands if Ho // t >= 2]
        if split:
            th = next((t for t in split if fits(t)), split[-1])
    return th


# ----------------------------------------------------------------------------
# Wrapper
# ----------------------------------------------------------------------------
@functools.partial(jax.jit, static_argnames=("row_tile",))
def dc_down_block2d(x, weight, bias, row_tile=None):
    """x: [B, H, W, C] (NHWC). weight: [C, C, 3, 3] (torch OIHW). bias: [C].

    Returns [B, (H//2)*(W//2), C], matching
    DCDownBlock2d(dim=C, downsample=False, shortcut=True).forward."""
    B, H, W, C = x.shape
    assert H % 2 == 0 and W % 2 == 0
    Ho, Wo = H // 2, W // 2

    vmem_cap = _vmem_capacity_bytes()
    vmem_limit = vmem_cap * 3 // 4            # ~48 MiB on v7x, ~96 MiB on v5e/v6e
    budget = vmem_cap * 11 // 20              # ~55% of physical VMEM

    TCo = 128 if (C > 128 and C % 128 == 0) else C
    nCo = C // TCo
    fuse = (C % 128 == 0)
    in_item = jnp.dtype(x.dtype).itemsize

    if row_tile is None:
        TH = _pick_row_tile(Ho, Wo, C, TCo, in_item, fuse, budget,
                            want_split=(B == 1))
    else:
        TH = int(row_tile)
        assert Ho % TH == 0, "row_tile must divide H//2"
        assert TH == Ho or (TH * Wo) % 8 == 0, "row_tile*Wo must be sublane aligned"
    nT = Ho // TH

    # --- weights: fold the 2x2 avg-pool shortcut (+0.25*I on taps (1..2,1..2),
    # exact in f32), pack to [9C, C] in operand order. ---
    wt = jnp.transpose(weight, (2, 3, 1, 0)).astype(jnp.float32)    # [3,3,Ci,Co]
    wt = wt.at[1:, 1:].add(0.25 * jnp.eye(C, dtype=jnp.float32))
    wpk = jnp.concatenate(
        [wt[1, 1], wt[1, 2],            # mid rows (ki=1): cols 2wo, 2wo+1
         wt[2, 1], wt[2, 2],            # bot rows (ki=2)
         wt[0, 1], wt[0, 2],            # top rows (ki=0)
         wt[1, 0], wt[2, 0], wt[0, 0]],  # col 2wo-1 taps (kj=0)
        axis=0).astype(x.dtype)                                      # [9C, C]
    b2 = bias.reshape(1, C).astype(jnp.float32)

    # --- free relayouts only: merge column pairs into lanes; tiny halo rows ---
    xw = x.reshape(B, H, Wo, 2 * C)          # row-major bitcast, no data movement
    if nT > 1:
        halo = jnp.concatenate(
            [jnp.zeros((B, 1, Wo, 2 * C), x.dtype),
             xw[:, 2 * TH - 1:H - 1:2 * TH]], axis=1)                # [B,nT,Wo,2C]
    else:
        halo = jnp.zeros((B, 1, Wo, 2 * C), x.dtype)

    kernel = functools.partial(_dc_down_kernel, TH=TH, Wo=Wo, C=C, fuse=fuse)

    out = pl.pallas_call(
        kernel,
        out_shape=jax.ShapeDtypeStruct((B, Ho * Wo, C), x.dtype),
        grid_spec=pltpu.PrefetchScalarGridSpec(
            num_scalar_prefetch=0,
            grid=(B, nT, nCo),
            in_specs=[
                pl.BlockSpec((1, 2 * TH, Wo, 2 * C), lambda b, t, n: (b, t, 0, 0)),
                pl.BlockSpec((1, 1, Wo, 2 * C), lambda b, t, n: (b, t, 0, 0)),
                # constant (b,t)-independent index maps -> resident in VMEM
                pl.BlockSpec((9 * C, TCo), lambda b, t, n: (0, n)),
                pl.BlockSpec((1, TCo), lambda b, t, n: (0, n)),
            ],
            out_specs=pl.BlockSpec((1, TH * Wo, TCo), lambda b, t, n: (b, t, n)),
        ),
        compiler_params=pltpu.CompilerParams(
            dimension_semantics=("parallel", "parallel", "parallel"),
            vmem_limit_bytes=int(vmem_limit),
        ),
    )(xw, halo, wpk, b2)
    return out


# ----------------------------------------------------------------------------
# Pure-JAX reference (reproduces the torch forward, NHWC input)
# ----------------------------------------------------------------------------
def _reference(x, weight, bias):
    B, H, W, C = x.shape
    Ho, Wo = H // 2, W // 2
    xn = jnp.transpose(x, (0, 3, 1, 2))
    conv = jax.lax.conv_general_dilated(
        xn, weight, window_strides=(2, 2), padding=((1, 1), (1, 1)),
        dimension_numbers=("NCHW", "OIHW", "NCHW"),
        precision=jax.lax.Precision.HIGHEST)
    conv = conv + bias[None, :, None, None]
    # pixel_unshuffle(2) -> unflatten -> mean == 2x2 average pool
    pool = xn.reshape(B, C, Ho, 2, Wo, 2).mean(axis=(3, 5))
    out = conv + pool
    return jnp.transpose(out.reshape(B, C, Ho * Wo), (0, 2, 1))


if __name__ == "__main__":
    def make_inputs(key, B, H, W, C):
        kx, kw, kb = jax.random.split(key, 3)
        x = jax.random.normal(kx, (B, H, W, C), jnp.float32)
        bound = 1.0 / math.sqrt(C * 9)
        w = jax.random.uniform(kw, (C, C, 3, 3), jnp.float32, -bound, bound)
        b = jax.random.uniform(kb, (C,), jnp.float32, -bound, bound)
        return x, w, b

    k0, k1, k2 = jax.random.split(jax.random.PRNGKey(0), 3)

    # 1) module demo shape: forward() input [2, 16, 16, 4] (NHWC), f32, auto tile
    x, w, b = make_inputs(k0, 2, 16, 16, 4)
    ref = _reference(x, w, b)
    out = jax.block_until_ready(dc_down_block2d(x, w, b))
    assert out.shape == (2, 64, 4)
    assert jnp.allclose(out, ref, atol=1e-3, rtol=1e-3), (
        float(jnp.max(jnp.abs(out - ref))))

    # 2) multi row-tile path (grid=(2,2,1)): exercises the halo-row input
    out2 = jax.block_until_ready(dc_down_block2d(x, w, b, row_tile=4))
    assert jnp.allclose(out2, ref, atol=1e-3, rtol=1e-3), (
        float(jnp.max(jnp.abs(out2 - ref))))

    # 3) bf16 activations (f32 accumulation) -- production MXU dtype path
    xb = x.astype(jnp.bfloat16)
    ref_b = _reference(xb.astype(jnp.float32), w, b)
    out3 = jax.block_until_ready(dc_down_block2d(xb, w, b, row_tile=4))
    assert out3.dtype == jnp.bfloat16
    assert jnp.allclose(out3.astype(jnp.float32), ref_b, atol=1e-1, rtol=1e-1), (
        float(jnp.max(jnp.abs(out3.astype(jnp.float32) - ref_b))))

    # 4) C=128: fused single K=9C im2col matmul + forced 2-way row split (B=1)
    x4, w4, b4 = make_inputs(k1, 1, 8, 8, 128)
    xb4 = x4.astype(jnp.bfloat16)
    ref4 = _reference(xb4.astype(jnp.float32), w4, b4)
    out4 = jax.block_until_ready(dc_down_block2d(xb4, w4, b4))
    assert jnp.allclose(out4.astype(jnp.float32), ref4, atol=5e-2, rtol=5e-2), (
        float(jnp.max(jnp.abs(out4.astype(jnp.float32) - ref4))))

    # 5) C=256: exercises the output-channel (co) grid axis (nCo=2)
    x5, w5, b5 = make_inputs(k2, 1, 8, 8, 256)
    xb5 = x5.astype(jnp.bfloat16)
    ref5 = _reference(xb5.astype(jnp.float32), w5, b5)
    out5 = jax.block_until_ready(dc_down_block2d(xb5, w5, b5))
    assert jnp.allclose(out5.astype(jnp.float32), ref5, atol=5e-2, rtol=5e-2), (
        float(jnp.max(jnp.abs(out5.astype(jnp.float32) - ref5))))

    print("KERNEL_OK")
</pallas_src>

<mosaic_0001>
module attributes {stable_mosaic.version = 11 : i64} {
  func.func @_dc_down_kernel(%arg0: i32, %arg1: i32, %arg2: i32, %arg3: memref<1x16x8x8xf32, #tpu.memory_space<vmem>>, %arg4: memref<1x1x8x8xf32, #tpu.memory_space<vmem>>, %arg5: memref<36x4xf32, #tpu.memory_space<vmem>>, %arg6: memref<1x4xf32, #tpu.memory_space<vmem>>, %arg7: memref<1x64x4xf32, #tpu.memory_space<vmem>>) attributes {dimension_semantics = [#tpu.dimension_semantics<parallel>, #tpu.dimension_semantics<parallel>, #tpu.dimension_semantics<parallel>], iteration_bounds = array<i64: 2, 1, 1>, scalar_prefetch = 0 : i64, scratch_operands = 0 : i64, tpu.core_type = #tpu.core_type<tc>, window_params = [{transform_indices = @transform_0, window_bounds = array<i64: 1, 16, 8, 8>}, {transform_indices = @transform_1, window_bounds = array<i64: 1, 1, 8, 8>}, {transform_indices = @transform_2, window_bounds = array<i64: 36, 4>}, {transform_indices = @transform_3, window_bounds = array<i64: 1, 4>}, {transform_indices = @transform_4, window_bounds = array<i64: 1, 64, 4>}]} {
    %c0 = arith.constant 0 : index
    %c0_0 = arith.constant 0 : index
    %c0_1 = arith.constant 0 : index
    %c0_2 = arith.constant 0 : index
    %0 = vector.load %arg3[%c0, %c0_0, %c0_1, %c0_2] : memref<1x16x8x8xf32, #tpu.memory_space<vmem>>, vector<1x16x8x8xf32>
    %1 = vector.shape_cast %0 : vector<1x16x8x8xf32> to vector<16x8x8xf32>
    %2 = vector.shape_cast %1 : vector<16x8x8xf32> to vector<8x2x8x8xf32>
    %3 = vector.extract_strided_slice %2 {offsets = [0, 0, 0, 0], sizes = [8, 1, 8, 8], strides = [1, 1, 1, 1]} : vector<8x2x8x8xf32> to vector<8x1x8x8xf32>
    %4 = vector.shape_cast %3 : vector<8x1x8x8xf32> to vector<8x8x8xf32>
    %5 = vector.extract_strided_slice %2 {offsets = [0, 1, 0, 0], sizes = [8, 1, 8, 8], strides = [1, 1, 1, 1]} : vector<8x2x8x8xf32> to vector<8x1x8x8xf32>
    %6 = vector.shape_cast %5 : vector<8x1x8x8xf32> to vector<8x8x8xf32>
    %c0_3 = arith.constant 0 : index
    %c0_4 = arith.constant 0 : index
    %c0_5 = arith.constant 0 : index
    %c0_6 = arith.constant 0 : index
    %7 = vector.load %arg4[%c0_3, %c0_4, %c0_5, %c0_6] : memref<1x1x8x8xf32, #tpu.memory_space<vmem>>, vector<1x1x8x8xf32>
    %8 = vector.shape_cast %7 : vector<1x1x8x8xf32> to vector<1x8x8xf32>
    %9 = vector.extract_strided_slice %6 {offsets = [0, 0, 0], sizes = [7, 8, 8], strides = [1, 1, 1]} : vector<8x8x8xf32> to vector<7x8x8xf32>
    %10 = tpu.concatenate %8, %9 in 0 : vector<1x8x8xf32>, vector<7x8x8xf32> -> vector<8x8x8xf32>
    %cst = arith.constant 0.000000e+00 : f32
    %11 = vector.broadcast %cst : f32 to vector<8x1x4xf32>
    %12 = vector.extract_strided_slice %4 {offsets = [0, 0, 4], sizes = [8, 7, 4], strides = [1, 1, 1]} : vector<8x8x8xf32> to vector<8x7x4xf32>
    %13 = tpu.concatenate %11, %12 in 1 : vector<8x1x4xf32>, vector<8x7x4xf32> -> vector<8x8x4xf32>
    %cst_7 = arith.constant 0.000000e+00 : f32
    %14 = vector.broadcast %cst_7 : f32 to vector<8x1x4xf32>
    %15 = vector.extract_strided_slice %6 {offsets = [0, 0, 4], sizes = [8, 7, 4], strides = [1, 1, 1]} : vector<8x8x8xf32> to vector<8x7x4xf32>
    %16 = tpu.concatenate %14, %15 in 1 : vector<8x1x4xf32>, vector<8x7x4xf32> -> vector<8x8x4xf32>
    %cst_8 = arith.constant 0.000000e+00 : f32
    %17 = vector.broadcast %cst_8 : f32 to vector<8x1x4xf32>
    %18 = vector.extract_strided_slice %10 {offsets = [0, 0, 4], sizes = [8, 7, 4], strides = [1, 1, 1]} : vector<8x8x8xf32> to vector<8x7x4xf32>
    %19 = tpu.concatenate %17, %18 in 1 : vector<8x1x4xf32>, vector<8x7x4xf32> -> vector<8x8x4xf32>
    %20 = vector.shape_cast %4 : vector<8x8x8xf32> to vector<64x8xf32>
    %21 = vector.shape_cast %6 : vector<8x8x8xf32> to vector<64x8xf32>
    %22 = vector.shape_cast %10 : vector<8x8x8xf32> to vector<64x8xf32>
    %23 = vector.shape_cast %13 : vector<8x8x4xf32> to vector<64x4xf32>
    %24 = vector.shape_cast %16 : vector<8x8x4xf32> to vector<64x4xf32>
    %25 = vector.shape_cast %19 : vector<8x8x4xf32> to vector<64x4xf32>
    %c0_9 = arith.constant 0 : index
    %c0_10 = arith.constant 0 : index
    %26 = vector.load %arg5[%c0_9, %c0_10] : memref<36x4xf32, #tpu.memory_space<vmem>>, vector<8x4xf32>
    %cst_11 = arith.constant dense<0.000000e+00> : vector<64x4xf32>
    %27 = tpu.matmul %20, %26, %cst_11 {dimension_numbers = #tpu.dot_dimension_numbers<[1], [0], [0], [1], [0, 0, 1, 1], [], []>} : vector<64x8xf32>, vector<8x4xf32>, vector<64x4xf32> -> vector<64x4xf32>
    %c8 = arith.constant 8 : index
    %c0_12 = arith.constant 0 : index
    %28 = vector.load %arg5[%c8, %c0_12] : memref<36x4xf32, #tpu.memory_space<vmem>>, vector<8x4xf32>
    %cst_13 = arith.constant dense<0.000000e+00> : vector<64x4xf32>
    %29 = tpu.matmul %21, %28, %cst_13 {dimension_numbers = #tpu.dot_dimension_numbers<[1], [0], [0], [1], [0, 0, 1, 1], [], []>} : vector<64x8xf32>, vector<8x4xf32>, vector<64x4xf32> -> vector<64x4xf32>
    %30 = arith.addf %27, %29 : vector<64x4xf32>
    %c16 = arith.constant 16 : index
    %c0_14 = arith.constant 0 : index
    %31 = vector.load %arg5[%c16, %c0_14] : memref<36x4xf32, #tpu.memory_space<vmem>>, vector<8x4xf32>
    %cst_15 = arith.constant dense<0.000000e+00> : vector<64x4xf32>
    %32 = tpu.matmul %22, %31, %cst_15 {dimension_numbers = #tpu.dot_dimension_numbers<[1], [0], [0], [1], [0, 0, 1, 1], [], []>} : vector<64x8xf32>, vector<8x4xf32>, vector<64x4xf32> -> vector<64x4xf32>
    %33 = arith.addf %30, %32 : vector<64x4xf32>
    %c24 = arith.constant 24 : index
    %c0_16 = arith.constant 0 : index
    %34 = vector.load %arg5[%c24, %c0_16] : memref<36x4xf32, #tpu.memory_space<vmem>>, vector<4x4xf32>
    %cst_17 = arith.constant dense<0.000000e+00> : vector<64x4xf32>
    %35 = tpu.matmul %23, %34, %cst_17 {dimension_numbers = #tpu.dot_dimension_numbers<[1], [0], [0], [1], [0, 0, 1, 1], [], []>} : vector<64x4xf32>, vector<4x4xf32>, vector<64x4xf32> -> vector<64x4xf32>
    %36 = arith.addf %33, %35 : vector<64x4xf32>
    %c28 = arith.constant 28 : index
    %c0_18 = arith.constant 0 : index
    %37 = vector.load %arg5[%c28, %c0_18] : memref<36x4xf32, #tpu.memory_space<vmem>>, vector<4x4xf32>
    %cst_19 = arith.constant dense<0.000000e+00> : vector<64x4xf32>
    %38 = tpu.matmul %24, %37, %cst_19 {dimension_numbers = #tpu.dot_dimension_numbers<[1], [0], [0], [1], [0, 0, 1, 1], [], []>} : vector<64x4xf32>, vector<4x4xf32>, vector<64x4xf32> -> vector<64x4xf32>
    %39 = arith.addf %36, %38 : vector<64x4xf32>
    %c32 = arith.constant 32 : index
    %c0_20 = arith.constant 0 : index
    %40 = vector.load %arg5[%c32, %c0_20] : memref<36x4xf32, #tpu.memory_space<vmem>>, vector<4x4xf32>
    %cst_21 = arith.constant dense<0.000000e+00> : vector<64x4xf32>
    %41 = tpu.matmul %25, %40, %cst_21 {dimension_numbers = #tpu.dot_dimension_numbers<[1], [0], [0], [1], [0, 0, 1, 1], [], []>} : vector<64x4xf32>, vector<4x4xf32>, vector<64x4xf32> -> vector<64x4xf32>
    %42 = arith.addf %39, %41 : vector<64x4xf32>
    %c0_22 = arith.constant 0 : index
    %c0_23 = arith.constant 0 : index
    %43 = vector.load %arg6[%c0_22, %c0_23] : memref<1x4xf32, #tpu.memory_space<vmem>>, vector<1x4xf32>
    %44 = vector.broadcast %43 : vector<1x4xf32> to vector<64x4xf32>
    %45 = arith.addf %42, %44 : vector<64x4xf32>
    %c0_24 = arith.constant 0 : index
    %c0_25 = arith.constant 0 : index
    %c0_26 = arith.constant 0 : index
    %46 = vector.load %arg7[%c0_24, %c0_25, %c0_26] : memref<1x64x4xf32, #tpu.memory_space<vmem>>, vector<1x64x4xf32>
    %47 = vector.shape_cast %46 : vector<1x64x4xf32> to vector<64x4xf32>
    %48 = vector.shape_cast %45 : vector<64x4xf32> to vector<1x64x4xf32>
    tpu.vector_store %arg7[%c0_24, %c0_25, %c0_26], %48 {strides = array<i32>} : memref<1x64x4xf32, #tpu.memory_space<vmem>>, vector<1x64x4xf32>,
    return
  }
  func.func @transform_0(%arg0: i32, %arg1: i32, %arg2: i32) -> (i32, i32, i32, i32) {
    %c0_i32 = arith.constant 0 : i32
    %c0_i32_0 = arith.constant 0 : i32
    %c0_i32_1 = arith.constant 0 : i32
    return %arg0, %arg1, %c0_i32, %c0_i32_0 : i32, i32, i32, i32
  }
  func.func @transform_1(%arg0: i32, %arg1: i32, %arg2: i32) -> (i32, i32, i32, i32) {
    %c0_i32 = arith.constant 0 : i32
    %c0_i32_0 = arith.constant 0 : i32
    %c0_i32_1 = arith.constant 0 : i32
    return %arg0, %arg1, %c0_i32, %c0_i32_0 : i32, i32, i32, i32
  }
  func.func @transform_2(%arg0: i32, %arg1: i32, %arg2: i32) -> (i32, i32) {
    %c0_i32 = arith.constant 0 : i32
    %c0_i32_0 = arith.constant 0 : i32
    return %c0_i32, %arg2 : i32, i32
  }
  func.func @transform_3(%arg0: i32, %arg1: i32, %arg2: i32) -> (i32, i32) {
    %c0_i32 = arith.constant 0 : i32
    %c0_i32_0 = arith.constant 0 : i32
    return %c0_i32, %arg2 : i32, i32
  }
  func.func @transform_4(%arg0: i32, %arg1: i32, %arg2: i32) -> (i32, i32, i32) {
    %c0_i32 = arith.constant 0 : i32
    return %arg0, %arg1, %arg2 : i32, i32, i32
  }
}

</mosaic_0001>

<bundles_post_ra>
// kernel: dc_down_block2d.1
= control target key start
LH: loop header
LB: loop body
LE: loop exit
PB: predicated region body
PF: predicated region fallthrough
CT: control target
= control target key end

     0   :  { %s1642_s15 = smov 0   ;;  %s1644_s16 = smov 0   ;;  %s1832_s0 = inlined_call_operand.vmem [shape: f32[2,16,8,8], index: 0, kind: input, shape index: {}]   ;;  %s1833_s1 = inlined_call_operand.vmem [shape: f32[2,1,8,8], index: 1, kind: input, shape index: {}]   ;;  %s1834_s2 = inlined_call_operand.vmem [shape: f32[36,4], index: 2, kind: input, shape index: {}]   ;;  %s1835_s3 = inlined_call_operand.vmem [shape: f32[1,4], index: 3, kind: input, shape index: {}]   ;;  %s1836_s4 = inlined_call_operand.vmem [shape: f32[2,64,4], index: 4, kind: output, shape index: {}]  }
   0x1   :  { %s1646_s17 = smov 0  }
   0x2 LB: > { %s33_s18 = sadd.s32 1, %s1610_s16  ;;  %p1367_p0 = scmp.ge.s32.totalorder %s1614_s17, 1  ;;  %s1614_s17 = sphi %s1646_s17, %s14_s17   ;;  %s1610_s16 = sphi %s1644_s16, %s1838_s16   ;;  %s1606_s15 = sphi %s1642_s15, %s1837_s15  }
   0x3   : > { %p35_p1 = scmp.ge.s32.totalorder %s33_s18, 2  ;;  %p223_p2 = scmp.lt.s32.totalorder %s1614_s17, 3 }
   0x5   : > { %s1840_s18 = smov (%p35_p1, %s33_s18), 0  ;;  %p224_p3 = pnand %p1367_p0, %p223_p2 }
   0x6   : > { %p275_p4 = scmp.lt.s32.totalorder (!%p224_p3), %s1606_s15, 1  ;;  %s1616_s5 = smov (!%p224_p3), 124  }
   0x7   : > { %227 = sbr.rel (%p224_p3) target bundleno = 368 (0x170), region = 36 }
   0xc   : > { %v432_v0 = vld [vmem:[%s1834_s2 + $0x8] sm:$0xff]  ;;  %v431_v1 = vld [vmem:[%s1834_s2] sm:$0xff]  ;;  %v676_v2 = vld [vmem:[%s1834_s2 + $0x10] sm:$0xff]  ;;  %vm818_vm0 = vcmask 1043456   ;;  %s1842_s15 = smov (!%p275_p4, %s1606_s15), 1  ;;  %vm433_vm1 = vcmask 64512  }
   0xd   : > { %1483 = vmatprep.subr.mxu0 %v432_v0  ;;  %1497 = vmatprep.subr.mxu1 %v431_v1  ;;  %v792_v3 = vld [vmem:[%s1834_s2 + $0x18] sm:$0xf]  ;;  %s1427_s27 = sshll.u32 %s1842_s15, 7  ;;  %v935_v17 = vld [vmem:[%s1834_s2 + $0x1c] sm:$0xf]  ;;  %s1370_s10 = sshll.u32 %s1842_s15, 3 }
   0xe   : > { %1484 = vmatpush3.msra.mxu0 %v432_v0  ;;  %1498 = vmatpush3.msra.mxu1 %v431_v1  ;;  %s1679_s30 = scalar_lea.vmem %s1832_s0, %s1427_s27  ;;  %v1707_v20 = vld [vmem:[%s1834_s2 + $0x20] sm:$0xf]  ;;  %s290_s13 = scalar_lea.vmem %s1833_s1, %s1370_s10  ;;  %vm368_vm2 = vcmask 1040384   ;;  %vm793_vm3 = vcmask 31744  }
   0xf   : > { %1511 = vmatprep.subr.mxu0 %v676_v2  ;;  %1525 = vmatprep.subr.msk.mxu1 %vm818_vm0, %v792_v3  ;;  %v311_v4 = vld [vmem:[%s1679_s30] sm:$0xff]  ;;  %v313_v6 = vld [vmem:[%s1679_s30 + $0x10] sm:$0xff]  ;;  %v312_v12 = vld [vmem:[%s1679_s30 + $0x8] sm:$0xff]  ;;  %s1428_s14 = sshll.u32 %s1842_s15, 6 }
  0x10   : > { %v315_v5 = vld [vmem:[%s1679_s30 + $0x20] sm:$0xff]  ;;  %v336_v7 = vrot.slane %v311_v4, 7  ;;  %v317_v9 = vld [vmem:[%s1679_s30 + $0x30] sm:$0xff]  ;;  %1499 = vmatprep.mubr.msk.f32.mxu1 %vm433_vm1, %v311_v4  ;;  %v337_v10 = vrot.slane %v313_v6, 7  ;;  %v314_v15 = vld [vmem:[%s1679_s30 + $0x18] sm:$0xff]  ;;  %1485 = vmatprep.mubr.msk.f32.mxu0 %vm433_vm1, %v312_v12  ;;  %v385_v29 = vrot.slane %v312_v12, 7  ;;  %s1805_s23 = scalar_lea.vmem %s1836_s4, %s1428_s14 }
  0x11   : > { %v338_v8 = vrot.slane %v315_v5, 7  ;;  %1500 = vmatmul.mubr.msk.f32.vlgmr.msra.gmra.mxu1 %vm433_vm1, %v313_v6  ;;  %v339_v11 = vrot.slane %v317_v9, 7  ;;  %v319_v13 = vld [vmem:[%s1679_s30 + $0x40] sm:$0xff]  ;;  %v321_v14 = vld [vmem:[%s1679_s30 + $0x50] sm:$0xff]  ;;  %v316_v16 = vld [vmem:[%s1679_s30 + $0x28] sm:$0xff]  ;;  %1486 = vmatmul.mubr.msk.f32.vlgmr.msra.gmra.mxu0 %vm433_vm1, %v314_v15  ;;  %v386_v30 = vrot.slane %v314_v15, 7 }
  0x12   : > { %344 = vrot.lane.b32.xlu0 %v336_v7, %s1616_s5  ;;  %1502 = vmatprep.mubr.msk.f32.mxu1 %vm433_vm1, %v315_v5  ;;  %v340_v18 = vrot.slane %v319_v13, 7  ;;  %v341_v19 = vrot.slane %v321_v14, 7  ;;  %v323_v21 = vld [vmem:[%s1679_s30 + $0x60] sm:$0xff]  ;;  %v325_v22 = vld [vmem:[%s1679_s30 + $0x70] sm:$0xff]  ;;  %v318_v23 = vld [vmem:[%s1679_s30 + $0x38] sm:$0xff]  ;;  %v387_v34 = vrot.slane %v316_v16, 7 }
  0x13   : > { %348 = vrot.lane.b32.xlu1 %v338_v8, %s1616_s5  ;;  %1526 = vmatpush3.msk.msra.mxu1 %vm818_vm0, %v792_v3  ;;  %v320_v24 = vld [vmem:[%s1679_s30 + $0x48] sm:$0xff]  ;;  %v342_v25 = vrot.slane %v323_v21, 7  ;;  %v343_v26 = vrot.slane %v325_v22, 7  ;;  %v322_v27 = vld [vmem:[%s1679_s30 + $0x58] sm:$0xff]  ;;  %v327_v31 = vld [vmem:[%s290_s13] sm:$0xff]  ;;  %v388_v35 = vrot.slane %v318_v23, 7 }
  0x14   : > { %1488 = vmatprep.mubr.msk.f32.mxu0 %vm433_vm1, %v316_v16  ;;  %1512 = vmatpush3.msra.mxu0 %v676_v2  ;;  %v324_v28 = vld [vmem:[%s1679_s30 + $0x68] sm:$0xff]  ;;  %v326_v32 = vld [vmem:[%s1679_s30 + $0x78] sm:$0xff]  ;;  %v426_v33 = vrot.slane %v327_v31, 7  ;;  %v389_v36 = vrot.slane %v320_v24, 7  ;;  %v390_v37 = vrot.slane %v322_v27, 7 }
  0x15   : > { %1503 = vmatmul.mubr.msk.f32.gmra.mxu1 %vm433_vm1, %v317_v9  ;;  %1539 = vmatprep.subr.msk.mxu0 %vm818_vm0, %v935_v17  ;;  %v391_v38 = vrot.slane %v324_v28, 7  ;;  %v392_v39 = vrot.slane %v326_v32, 7 }
  0x16   : > { %346 = vrot.lane.b32.xlu0 %v337_v10, %s1616_s5  ;;  %1489 = vmatmul.mubr.msk.f32.gmra.mxu0 %vm433_vm1, %v318_v23 }
  0x17   : > { %350 = vrot.lane.b32.xlu1 %v339_v11, %s1616_s5  ;;  %1505 = vmatprep.mubr.msk.f32.mxu1 %vm433_vm1, %v319_v13 }
  0x18   : > { %1491 = vmatprep.mubr.msk.f32.mxu0 %vm433_vm1, %v320_v24  ;;  %1553 = vmatprep.subr.msk.mxu1 %vm818_vm0, %v1707_v20 }
  0x19   : > { %1506 = vmatmul.mubr.msk.f32.gmra.mxu1 %vm433_vm1, %v321_v14 }
  0x1a   : > { %352 = vrot.lane.b32.xlu0 %v340_v18, %s1616_s5  ;;  %1492 = vmatmul.mubr.msk.f32.gmra.mxu0 %vm433_vm1, %v322_v27 }
  0x1b   : > { %354 = vrot.lane.b32.xlu1 %v341_v19, %s1616_s5  ;;  %1508 = vmatprep.mubr.msk.f32.mxu1 %vm433_vm1, %v323_v21 }
  0x1c   : > { %1494 = vmatprep.mubr.msk.f32.mxu0 %vm433_vm1, %v324_v28 }
  0x1d   : > { %1509 = vmatmul.mubr.msk.f32.gmra.mxu1 %vm433_vm1, %v325_v22 }
  0x1e   : > { %356 = vrot.lane.b32.xlu0 %v342_v25, %s1616_s5  ;;  %1495 = vmatmul.mubr.msk.f32.gmra.mxu0 %vm433_vm1, %v326_v32 }
  0x1f   : > { %358 = vrot.lane.b32.xlu1 %v343_v26, %s1616_s5  ;;  %1513 = vmatprep.mubr.msk.f32.mxu0 %vm433_vm1, %v327_v31 }
  0x22   : > { %393 = vrot.lane.b32.xlu0 %v385_v29, %s1616_s5  ;;  %1514 = vmatmul.mubr.msk.f32.vlgmr.msra.gmra.mxu0 %vm433_vm1, %v312_v12 }
  0x23   : > { %395 = vrot.lane.b32.xlu1 %v386_v30, %s1616_s5  ;;  %1516 = vmatprep.mubr.msk.f32.mxu0 %vm433_vm1, %v314_v15 }
  0x24   : > { %1540 = vmatpush3.msk.msra.mxu0 %vm818_vm0, %v935_v17 }
  0x26   : > { %427 = vrot.lane.b32.xlu0 %v426_v33, %s1616_s5  ;;  %1517 = vmatmul.mubr.msk.f32.gmra.mxu0 %vm433_vm1, %v316_v16 }
  0x27   : > { %397 = vrot.lane.b32.xlu1 %v387_v34, %s1616_s5  ;;  %1519 = vmatprep.mubr.msk.f32.mxu0 %vm433_vm1, %v318_v23 }
  0x2a   : > { %399 = vrot.lane.b32.xlu0 %v388_v35, %s1616_s5  ;;  %1520 = vmatmul.mubr.msk.f32.gmra.mxu0 %vm433_vm1, %v320_v24 }
  0x2b   : > { %401 = vrot.lane.b32.xlu1 %v389_v36, %s1616_s5  ;;  %1522 = vmatprep.mubr.msk.f32.mxu0 %vm433_vm1, %v322_v27 }
  0x2e   : > { %403 = vrot.lane.b32.xlu0 %v390_v37, %s1616_s5  ;;  %1523 = vmatmul.mubr.msk.f32.gmra.mxu0 %vm433_vm1, %v324_v28 }
  0x2f   : > { %405 = vrot.lane.b32.xlu1 %v391_v38, %s1616_s5 }
  0x32   : > { %407 = vrot.lane.b32.xlu0 %v392_v39, %s1616_s5 }
  0x84   : > { %v345_v40 = vpop.permute.xlu0 %344 }
  0x85   : > { %v349_v41 = vpop.permute.xlu1 %348  ;;  %v369_v42 = vsel %vm368_vm2, 0.0, %v345_v40 }
  0x86   : > { %1527 = vmatprep.mubr.msk.f32.mxu1 %vm793_vm3, %v369_v42  ;;  %v371_v46 = vsel %vm368_vm2, 0.0, %v349_v41 }
  0x88   : > { %v347_v43 = vpop.permute.xlu0 %346 }
  0x89   : > { %v351_v44 = vpop.permute.xlu1 %350  ;;  %v370_v45 = vsel %vm368_vm2, 0.0, %v347_v43 }
  0x8a   : > { %1528 = vmatmul.mubr.msk.f32.vlgmr.msra.gmra.mxu1 %vm793_vm3, %v370_v45  ;;  %v372_v47 = vsel %vm368_vm2, 0.0, %v351_v44 }
  0x8b   : > { %1530 = vmatprep.mubr.msk.f32.mxu1 %vm793_vm3, %v371_v46  ;;  %1554 = vmatpush3.msk.msra.mxu1 %vm818_vm0, %v1707_v20 }
  0x8c   : > { %v353_v48 = vpop.permute.xlu0 %352 }
  0x8d   : > { %v355_v49 = vpop.permute.xlu1 %354  ;;  %v373_v50 = vsel %vm368_vm2, 0.0, %v353_v48 }
  0x8e   : > { %1531 = vmatmul.mubr.msk.f32.gmra.mxu1 %vm793_vm3, %v372_v47  ;;  %v374_v51 = vsel %vm368_vm2, 0.0, %v355_v49 }
  0x8f   : > { %1533 = vmatprep.mubr.msk.f32.mxu1 %vm793_vm3, %v373_v50 }
  0x90   : > { %v357_v52 = vpop.permute.xlu0 %356 }
  0x91   : > { %v359_v53 = vpop.permute.xlu1 %358  ;;  %v375_v54 = vsel %vm368_vm2, 0.0, %v357_v52 }
  0x92   : > { %1534 = vmatmul.mubr.msk.f32.gmra.mxu1 %vm793_vm3, %v374_v51  ;;  %v376_v55 = vsel %vm368_vm2, 0.0, %v359_v53 }
  0x93   : > { %1536 = vmatprep.mubr.msk.f32.mxu1 %vm793_vm3, %v375_v54 }
  0x94   : > { %v394_v56 = vpop.permute.xlu0 %393 }
  0x95   : > { %v396_v57 = vpop.permute.xlu1 %395  ;;  %v417_v58 = vsel %vm368_vm2, 0.0, %v394_v56  ;;  %v1424_v56 = vld [vmem:[%s1835_s3] ss:$0 sm:$0xff] }
  0x96   : > { %v418_v59 = vsel %vm368_vm2, 0.0, %v396_v57  ;;  %1537 = vmatmul.mubr.msk.f32.gmra.mxu1 %vm793_vm3, %v376_v55  ;;  %1541 = vmatprep.mubr.msk.f32.mxu0 %vm793_vm3, %v417_v58 }
  0x97   : > { %1542 = vmatmul.mubr.msk.f32.vlgmr.msra.gmra.mxu0 %vm793_vm3, %v418_v59 }
  0x98   : > { %v428_v60 = vpop.permute.xlu0 %427 }
  0x99   : > { %v398_v61 = vpop.permute.xlu1 %397  ;;  %v430_v62 = vsel %vm368_vm2, 0.0, %v428_v60 }
  0x9a   : > { %v419_v63 = vsel %vm368_vm2, 0.0, %v398_v61  ;;  %1555 = vmatprep.mubr.msk.f32.mxu1 %vm793_vm3, %v430_v62 }
  0x9b   : > { %1544 = vmatprep.mubr.msk.f32.mxu0 %vm793_vm3, %v419_v63  ;;  %1556 = vmatmul.mubr.msk.f32.vlgmr.msra.gmra.mxu1 %vm793_vm3, %v417_v58 }
  0x9c   : > { %1558 = vmatprep.mubr.msk.f32.mxu1 %vm793_vm3, %v418_v59  ;;  %v400_v0 = vpop.permute.xlu0 %399 }
  0x9d   : > { %v402_v1 = vpop.permute.xlu1 %401  ;;  %v420_v2 = vsel %vm368_vm2, 0.0, %v400_v0 }
  0x9e   : > { %v421_v3 = vsel %vm368_vm2, 0.0, %v402_v1  ;;  %1545 = vmatmul.mubr.msk.f32.gmra.mxu0 %vm793_vm3, %v420_v2 }
  0x9f   : > { %1559 = vmatmul.mubr.msk.f32.gmra.mxu1 %vm793_vm3, %v419_v63  ;;  %1547 = vmatprep.mubr.msk.f32.mxu0 %vm793_vm3, %v421_v3 }
  0xa0   : > { %1561 = vmatprep.mubr.msk.f32.mxu1 %vm793_vm3, %v420_v2  ;;  %v404_v4 = vpop.permute.xlu0 %403 }
  0xa1   : > { %v406_v5 = vpop.permute.xlu1 %405  ;;  %v422_v6 = vsel %vm368_vm2, 0.0, %v404_v4 }
  0xa2   : > { %v423_v7 = vsel %vm368_vm2, 0.0, %v406_v5  ;;  %1548 = vmatmul.mubr.msk.f32.gmra.mxu0 %vm793_vm3, %v422_v6 }
  0xa3   : > { %1562 = vmatmul.mubr.msk.f32.gmra.mxu1 %vm793_vm3, %v421_v3  ;;  %1550 = vmatprep.mubr.msk.f32.mxu0 %vm793_vm3, %v423_v7 }
  0xa4   : > { %1564 = vmatprep.mubr.msk.f32.mxu1 %vm793_vm3, %v422_v6  ;;  %v408_v8 = vpop.permute.xlu0 %407 }
  0xa5   : > { %v424_v9 = vsel %vm368_vm2, 0.0, %v408_v8 }
  0xa6   : > { %1551 = vmatmul.mubr.msk.f32.gmra.mxu0 %vm793_vm3, %v424_v9 }
  0xa7   : > { %1565 = vmatmul.mubr.msk.f32.gmra.mxu1 %vm793_vm3, %v423_v7 }
  0xd1   : > { %v1487_v10 = vpop.f32.mrf.mxu0  ;;  %v1501_v15 = vpop.f32.mrf.mxu1 }
  0xd2   : > { %v643_v37 = vadd.f32 %v1501_v15, %v1487_v10 }
  0xd3   : > { %v516_v11 = vpop.f32.mrf.mxu0  ;;  %v637_v17 = vpop.f32.mrf.mxu1 }
  0xd4   : > { %v638_v39 = vadd.f32 %v637_v17, %v516_v11 }
  0xd5   : > { %v1504_v19 = vpop.f32.mrf.mxu1 }
  0xd6   : > { %v1490_v12 = vpop.f32.mrf.mxu0 }
  0xd7   : > { %v647_v21 = vpop.f32.mrf.mxu1  ;;  %v653_v44 = vadd.f32 %v1504_v19, %v1490_v12 }
  0xd8   : > { %v526_v13 = vpop.f32.mrf.mxu0 }
  0xd9   : > { %v1507_v23 = vpop.f32.mrf.mxu1  ;;  %v648_v49 = vadd.f32 %v647_v21, %v526_v13 }
  0xda   : > { %v1493_v14 = vpop.f32.mrf.mxu0 }
  0xdb   : > { %v657_v25 = vpop.f32.mrf.mxu1  ;;  %v663_v54 = vadd.f32 %v1507_v23, %v1493_v14 }
  0xdc   : > { %v536_v16 = vpop.f32.mrf.mxu0 }
  0xdd   : > { %v1510_v27 = vpop.f32.mrf.mxu1  ;;  %v658_v60 = vadd.f32 %v657_v25, %v536_v16 }
  0xde   : > { %v1496_v18 = vpop.f32.mrf.mxu0 }
  0xdf   : > { %v667_v29 = vpop.f32.mrf.mxu1  ;;  %v673_v63 = vadd.f32 %v1510_v27, %v1496_v18 }
  0xe0   : > { %v546_v20 = vpop.f32.mrf.mxu0 }
  0xe1   : > { %v668_v7 = vadd.f32 %v667_v29, %v546_v20 }
  0xe2   : > { %v1515_v22 = vpop.f32.mrf.mxu0 }
  0xe3   : > { %v785_v42 = vadd.f32 %v1515_v22, %v643_v37 }
  0xe4   : > { %v745_v24 = vpop.f32.mrf.mxu0 }
  0xe5   : > { %v784_v46 = vadd.f32 %v745_v24, %v638_v39 }
  0xe6   : > { %v1518_v26 = vpop.f32.mrf.mxu0 }
  0xe7   : > { %v787_v53 = vadd.f32 %v1518_v26, %v653_v44 }
  0xe8   : > { %v755_v28 = vpop.f32.mrf.mxu0 }
  0xe9   : > { %v786_v59 = vadd.f32 %v755_v28, %v648_v49 }
  0xea   : > { %v1521_v30 = vpop.f32.mrf.mxu0 }
  0xeb   : > { %v789_v3 = vadd.f32 %v1521_v30, %v663_v54 }
  0xec   : > { %v765_v33 = vpop.f32.mrf.mxu0 }
  0xed   : > { %v788_v10 = vadd.f32 %v765_v33, %v658_v60 }
  0xee   : > { %v1524_v36 = vpop.f32.mrf.mxu0 }
  0xef   : > { %v791_v15 = vadd.f32 %v1524_v36, %v673_v63 }
  0xf0   : > { %v775_v41 = vpop.f32.mrf.mxu0 }
  0xf1   : > { %v790_v22 = vadd.f32 %v775_v41, %v668_v7 }
 0x14a   : > { %v1529_v31 = vpop.f32.mrf.mxu1 }
 0x14b   : > { %v928_v47 = vadd.f32 %v1529_v31, %v785_v42 }
 0x14c   : > { %v888_v32 = vpop.f32.mrf.mxu1 }
 0x14d   : > { %v927_v51 = vadd.f32 %v888_v32, %v784_v46 }
 0x14e   : > { %v1532_v34 = vpop.f32.mrf.mxu1 }
 0x14f   : > { %v930_v61 = vadd.f32 %v1532_v34, %v787_v53 }
 0x150   : > { %v898_v35 = vpop.f32.mrf.mxu1 }
 0x151   : > { %v929_v4 = vadd.f32 %v898_v35, %v786_v59 }
 0x152   : > { %v1535_v38 = vpop.f32.mrf.mxu1 }
 0x153   : > { %v932_v11 = vadd.f32 %v1535_v38, %v789_v3 }
 0x154   : > { %v908_v40 = vpop.f32.mrf.mxu1 }
 0x155   : > { %v931_v17 = vadd.f32 %v908_v40, %v788_v10 }
 0x156   : > { %v1538_v43 = vpop.f32.mrf.mxu1 }
 0x157   : > { %v1543_v45 = vpop.f32.mrf.mxu0  ;;  %v934_v24 = vadd.f32 %v1538_v43, %v791_v15 }
 0x158   : > { %v918_v48 = vpop.f32.mrf.mxu1  ;;  %v1069_v52 = vadd.f32 %v1543_v45, %v928_v47 }
 0x159   : > { %v1029_v50 = vpop.f32.mrf.mxu0  ;;  %v933_v30 = vadd.f32 %v918_v48, %v790_v22 }
 0x15a   : > { %v1068_v57 = vadd.f32 %v1029_v50, %v927_v51 }
 0x15b   : > { %v1557_v55 = vpop.f32.mrf.mxu1 }
 0x15c   : > { %v1189_v58 = vadd.f32 %v1557_v55, %v1069_v52 }
 0x15d   : > { %v1149_v62 = vpop.f32.mrf.mxu1 }
 0x15e   : > { %v1204_v0 = vadd.f32 %v1424_v56, %v1189_v58  ;;  %v1188_v1 = vadd.f32 %v1149_v62, %v1068_v57  ;;  %v1546_v2 = vpop.f32.mrf.mxu0 }
 0x15f   : > { %v1071_v5 = vadd.f32 %v1546_v2, %v930_v61  ;;  %v1560_v6 = vpop.f32.mrf.mxu1 }
 0x160   : > { %1212 = vst.msk [vmem:[%s1805_s23 + $0x8] sm:$0xff] %vm793_vm3, %v1204_v0  ;;  %v1203_v8 = vadd.f32 %v1424_v56, %v1188_v1  ;;  %v1039_v9 = vpop.f32.mrf.mxu0 }
 0x161   : > { %v1191_v12 = vadd.f32 %v1560_v6, %v1071_v5  ;;  %v1070_v13 = vadd.f32 %v1039_v9, %v929_v4  ;;  %v1159_v14 = vpop.f32.mrf.mxu1 }
 0x162   : > { %1211 = vst.msk [vmem:[%s1805_s23] sm:$0xff] %vm793_vm3, %v1203_v8  ;;  %v1549_v16 = vpop.f32.mrf.mxu0 }
 0x163   : > { %v1206_v18 = vadd.f32 %v1424_v56, %v1191_v12  ;;  %v1190_v19 = vadd.f32 %v1159_v14, %v1070_v13  ;;  %v1073_v21 = vadd.f32 %v1549_v16, %v932_v11  ;;  %v1563_v20 = vpop.f32.mrf.mxu1 }
 0x164   : > { %v1049_v23 = vpop.f32.mrf.mxu0 }
 0x165   : > { %1214 = vst.msk [vmem:[%s1805_s23 + $0x18] sm:$0xff] %vm793_vm3, %v1206_v18  ;;  %v1205_v25 = vadd.f32 %v1424_v56, %v1190_v19  ;;  %v1193_v26 = vadd.f32 %v1563_v20, %v1073_v21  ;;  %v1072_v27 = vadd.f32 %v1049_v23, %v931_v17  ;;  %v1169_v28 = vpop.f32.mrf.mxu1 }
 0x166   : > { %v1552_v29 = vpop.f32.mrf.mxu0 }
 0x167   : > { %1213 = vst.msk [vmem:[%s1805_s23 + $0x10] sm:$0xff] %vm793_vm3, %v1205_v25  ;;  %v1208_v31 = vadd.f32 %v1424_v56, %v1193_v26  ;;  %v1192_v32 = vadd.f32 %v1169_v28, %v1072_v27  ;;  %v1075_v33 = vadd.f32 %v1552_v29, %v934_v24  ;;  %v1566_v34 = vpop.f32.mrf.mxu1 }
 0x168   : > { %v1059_v35 = vpop.f32.mrf.mxu0 }
 0x169   : > { %1216 = vst.msk [vmem:[%s1805_s23 + $0x28] sm:$0xff] %vm793_vm3, %v1208_v31  ;;  %v1207_v36 = vadd.f32 %v1424_v56, %v1192_v32  ;;  %v1195_v37 = vadd.f32 %v1566_v34, %v1075_v33  ;;  %v1074_v38 = vadd.f32 %v1059_v35, %v933_v30  ;;  %v1179_v39 = vpop.f32.mrf.mxu1 }
 0x16b   : > { %1215 = vst.msk [vmem:[%s1805_s23 + $0x20] sm:$0xff] %vm793_vm3, %v1207_v36  ;;  %v1210_v40 = vadd.f32 %v1424_v56, %v1195_v37  ;;  %v1194_v41 = vadd.f32 %v1179_v39, %v1074_v38 }
 0x16d   : > { %1218 = vst.msk [vmem:[%s1805_s23 + $0x38] sm:$0xff] %vm793_vm3, %v1210_v40  ;;  %v1209_v42 = vadd.f32 %v1424_v56, %v1194_v41 }
 0x16f   : > { %1217 = vst.msk [vmem:[%s1805_s23 + $0x30] sm:$0xff] %vm793_vm3, %v1209_v42 }
 0x170 PF: > { %s14_s17 = sadd.s32 1, %s1614_s17   ;;  %s1837_s15 = smov %s1610_s16 }
 0x171   : > { %p11_p5 = scmp.ge.s32.totalorder %s14_s17, 4   ;;  %s1838_s16 = smov %s1840_s18 }
 0x173   :  { %13 = sbr.rel (!%p11_p5) target bundleno = 2 (0x2), region = 75 }

</bundles_post_ra>
